<compile_context>
chip_gen: v5e
topology: v5e:2x2
jax: 0.10.0
libtpu: 0.0.40
codegen_flags: <defaults>
</compile_context>

<pallas_src>
import functools

import numpy as np
import jax
import jax.numpy as jnp
from jax.experimental import pallas as pl
from jax.experimental.pallas import tpu as pltpu


# --------------------------------------------------------------------------
# Fused Pallas kernel: one grid step = TB batch elements, both GL layers.
#
# Slab layout (transposed / "natural"): the x block is (1, TB*F*C, N) with
# row index tb*F*C + f*C + c and lanes = N, i.e. a pure reshape of d_seq.
# Per TB chunk of shape (F*C, N) the kernel computes
#   spatial : z1^T = relu( kron(I_F, W_s^T) @ (x^T @ A_s_hat) )
#   temporal: y^T  = relu( kron(A_t_hat, W_t^T) @ z1^T )
# (A_s_hat / A_t_hat are symmetric after normalization, so the right-multiply
# by A_s_hat is exactly the reference's left-multiply, transposed.)
# No in-kernel transposes, no HBM round trip between the two layers.
# --------------------------------------------------------------------------
def _drgl_fused_kernel(a_s_ref, s_op_ref, t_op_ref, x_ref, o_ref, *, tb, fc):
    a_s = a_s_ref[...]      # (N, N)    symmetric normalized spatial adjacency
    s_op = s_op_ref[...]    # (FC, FC)  kron(I_F, W_s^T)
    t_op = t_op_ref[...]    # (FC, FC)  kron(A_t_hat, W_t^T)
    # Static unroll over TB chunks: operators stay at (FC, FC) (no kron with
    # I_TB), the live (FC, N) intermediates stay tiny, and the independent
    # chunks give the MXU several chains in flight.
    for i in range(tb):
        lo, hi = i * fc, (i + 1) * fc
        x = x_ref[0, lo:hi, :]                                    # (FC, N)
        v = jnp.dot(x, a_s, preferred_element_type=jnp.float32)   # spatial mix
        z = jnp.maximum(
            jnp.dot(s_op, v, preferred_element_type=jnp.float32), 0.0)
        y = jnp.maximum(
            jnp.dot(t_op, z, preferred_element_type=jnp.float32), 0.0)
        o_ref[0, lo:hi, :] = y.astype(o_ref.dtype)
    # NOTE: with N < 128 (toy shapes) the output store is lane-masked; in
    # production N = H*W*D >= 128 makes every matmul and store lane-dense.
    # TODO(synk): for N < 128 production sizes, add the in-kernel
    # (L,N)->(N,L) XLU-transpose variant so the MXU lane axis is TB*F*C.
    # TODO(synk): nn.Dropout of GLConv is identity in eval mode; not applied.


def _vmem_budgets():
    """(vmem_limit_bytes, pick_batch_tile budget) per TPU generation."""
    try:
        kind = jax.devices()[0].device_kind.lower()
    except Exception:
        kind = ""
    if ("v4" in kind) or ("v5" in kind) or ("v6" in kind):
        # 128 MiB physical VMEM: allow big per-step slabs (fewer grid steps).
        return 96 * 1024 * 1024, 72 * 1024 * 1024
    # v7x (64 MiB physical VMEM per TensorCore) and unknown chips: be safe.
    return 48 * 1024 * 1024, 40 * 1024 * 1024


def drgl_fused(a_s_hat, s_op, t_op, xs, batch_tile, fc):
    """xs: (G, TB*F*C, N) slabs.  Returns slabs of the same shape."""
    G, L, N = xs.shape
    vmem_limit, _ = _vmem_budgets()
    kernel = functools.partial(_drgl_fused_kernel, tb=batch_tile, fc=fc)

    # Constant operands: whole-array, SINGLE-buffered VMEM residents for the
    # entire call (not pipelined / double-buffered every grid step).
    resident = pl.BlockSpec(memory_space=pltpu.MemorySpace.VMEM)

    flops = int(G * batch_tile * (2 * fc * N * N + 4 * fc * fc * N))
    bytes_accessed = int(4 * (2 * G * L * N + N * N + 2 * fc * fc))

    return pl.pallas_call(
        kernel,
        out_shape=jax.ShapeDtypeStruct((G, L, N), xs.dtype),
        grid=(G,),
        in_specs=[
            resident,                                       # A_s_hat
            resident,                                       # kron(I_F, W_s^T)
            resident,                                       # kron(A_t_hat, W_t^T)
            pl.BlockSpec((1, L, N), lambda g: (g, 0, 0)),   # batched slab
        ],
        out_specs=pl.BlockSpec((1, L, N), lambda g: (g, 0, 0)),
        compiler_params=pltpu.CompilerParams(
            # Megacore sharding only pays when per-step work is several us;
            # the tiler prefers few big steps, so this is mostly a no-op.
            dimension_semantics=("parallel",),
            vmem_limit_bytes=vmem_limit,
        ),
        cost_estimate=pl.CostEstimate(
            flops=flops, transcendentals=0, bytes_accessed=bytes_accessed),
    )(a_s_hat, s_op, t_op, xs)


# --------------------------------------------------------------------------
# Adjacency helpers (init-time glue; match the PyTorch module exactly).
# --------------------------------------------------------------------------
def get_adj_from_3Dspace(feature_shape):
    H, W, D = feature_shape
    n = H * W * D

    def pos(h, w, d):
        h = np.clip(h, 0, H - 1)
        w = np.clip(w, 0, W - 1)
        d = np.clip(d, 0, D - 1)
        return h * (W * D) + w * D + d

    adj = np.zeros((n, n), dtype=np.int16)
    dirs = [-1, 0, 1]
    for i in range(H):
        for j in range(W):
            for k in range(D):
                c = pos(i, j, k)
                for di in dirs:
                    for dj in dirs:
                        for dk in dirs:
                            adj[c, pos(i + di, j + dj, k + dk)] = 1
    return adj


def get_adj_from_frame(frame_num):
    adj = np.zeros((frame_num, frame_num), dtype=np.int16)
    for i in range(frame_num - 1):
        adj[i, i + 1] = 1
        adj[i + 1, i] = 1
    return adj


def normalize_adj(adj, add_eye=True):
    a = jnp.asarray(adj, dtype=jnp.float32)
    if add_eye:
        a = a + jnp.eye(a.shape[-1], dtype=jnp.float32)
    deg = jnp.sum(a, axis=-1)
    # Zero-degree guard (the generated adjacencies always have self loops,
    # but avoid inf/nan for arbitrary inputs).
    d_inv_sqrt = jnp.where(deg > 0.0,
                           jax.lax.rsqrt(jnp.maximum(deg, 1e-12)), 0.0)
    return a * d_inv_sqrt[:, None] * d_inv_sqrt[None, :]


# --------------------------------------------------------------------------
# Init-time preparation (hoisted out of the forward; runs once).
# --------------------------------------------------------------------------
def pick_batch_tile(bs, frame, channel, feature_num, vmem_budget_bytes):
    """Largest batch tile (divisor of bs) whose per-step footprint fits the
    VMEM budget.  Fewer grid steps amortize the ~0.35 us/step pipeline
    overhead; we deliberately do NOT force >= 2 grid steps (megacore sharding
    on v7x only pays when per-step work is several microseconds)."""
    fc = frame * channel
    n = feature_num
    best = 1
    for tb in range(1, bs + 1):
        if bs % tb:
            continue
        rows = tb * fc
        need = 4 * (                        # f32 bytes
            2 * (n * n + 2 * fc * fc)       # residents (worst case 2x buffered)
            + 2 * 2 * rows * n)             # double-buffered in + out slabs
        if need <= vmem_budget_bytes:
            best = tb
    return best


def prepare_drgl_operators(adj_space, adj_frame, w_s, w_t):
    """Run once: normalized adjacencies + fused (F*C, F*C) left-operators.
    Operators are independent of the batch tile (no kron with I_TB)."""
    frame = adj_frame.shape[0]
    a_s_hat = normalize_adj(adj_space, add_eye=False)               # (N, N)
    a_t_hat = normalize_adj(adj_frame, add_eye=True)                # (F, F)
    w_s = jnp.asarray(w_s, jnp.float32)
    w_t = jnp.asarray(w_t, jnp.float32)
    # Spatial channel mixing, applied from the left in the transposed layout.
    s_op = jnp.kron(jnp.eye(frame, dtype=jnp.float32), w_s.T)       # (FC, FC)
    # Temporal adjacency and weight fused into ONE left operator.
    t_op = jnp.kron(a_t_hat, w_t.T)                                 # (FC, FC)
    # TODO(synk): cast a_s_hat / s_op / t_op (and the activation slab) to bf16
    # with f32 accumulation once MXU-bound at production sizes; relax tols.
    return a_s_hat, s_op, t_op


# --------------------------------------------------------------------------
# DRGLBlock forward: ONLY contiguous reshapes outside the Pallas kernel.
# --------------------------------------------------------------------------
def drgl_block_forward(d_seq, a_s_hat, s_op, t_op, batch_tile):
    bs, frame, channel, H, W, D = d_seq.shape
    n = H * W * D
    fc = frame * channel
    assert bs % batch_tile == 0
    G = bs // batch_tile

    # Pure contiguous reshape (NO XLA transpose): row = tb*F*C+f*C+c, lane = n.
    xs = d_seq.reshape(G, batch_tile * fc, n)
    out = drgl_fused(a_s_hat, s_op, t_op, xs, batch_tile, fc)
    # Pure contiguous reshape back to the original 6-D shape.
    return out.reshape(bs, frame, channel, H, W, D)


# --------------------------------------------------------------------------
# Pure-JAX reference (for correctness checking).
# --------------------------------------------------------------------------
def drgl_block_reference(d_seq, adj_space, adj_frame, w_s, w_t):
    bs, frame, channel, H, W, D = d_seq.shape
    n = H * W * D
    x = d_seq.reshape(bs, frame, channel, n).transpose(0, 1, 3, 2)
    a_s = normalize_adj(adj_space, add_eye=False)
    x = jnp.maximum(jnp.einsum("nm,bfmc,cd->bfnd", a_s, x, w_s), 0.0)
    x = x.transpose(0, 2, 1, 3)                                     # (bs,N,F,C)
    a_t = normalize_adj(adj_frame, add_eye=True)
    x = jnp.maximum(jnp.einsum("fg,bngc,cd->bnfd", a_t, x, w_t), 0.0)
    x = x.transpose(0, 2, 3, 1)
    return x.reshape(bs, frame, channel, H, W, D)


if __name__ == "__main__":
    # Small, deterministic configuration.
    bs, frame, channel = 2, 8, 4
    feature_shape = (2, 2, 4)            # H, W, D -> feature_num = 16
    H, W, D = feature_shape
    n = H * W * D

    key = jax.random.PRNGKey(0)
    k_x, k_ws, k_wt = jax.random.split(key, 3)

    d_seq = jax.random.uniform(k_x, (bs, frame, channel, H, W, D),
                               dtype=jnp.float32)
    # GLConv weights: torch.rand(in_channels, out_channels) -> uniform[0,1)
    w_s = jax.random.uniform(k_ws, (channel, channel), dtype=jnp.float32)
    w_t = jax.random.uniform(k_wt, (channel, channel), dtype=jnp.float32)

    adj_space = get_adj_from_3Dspace(feature_shape)
    adj_frame = get_adj_from_frame(frame)

    # Init-time (run once): per-generation budgets, tile pick, fused operators.
    _, budget = _vmem_budgets()
    tb = pick_batch_tile(bs, frame, channel, n, budget)
    a_s_hat, s_op, t_op = prepare_drgl_operators(adj_space, adj_frame, w_s, w_t)

    fwd = jax.jit(drgl_block_forward, static_argnums=(4,))
    out = fwd(d_seq, a_s_hat, s_op, t_op, tb)
    out = jax.block_until_ready(out)

    ref = jax.block_until_ready(
        drgl_block_reference(d_seq, adj_space, adj_frame, w_s, w_t))

    assert out.shape == d_seq.shape, (out.shape, d_seq.shape)
    np.testing.assert_allclose(np.asarray(out), np.asarray(ref),
                               rtol=1e-5, atol=1e-4)

    print("KERNEL_OK")
</pallas_src>

<mosaic_0001>
module attributes {stable_mosaic.version = 11 : i64} {
  func.func @_drgl_fused_kernel(%arg0: i32, %arg1: memref<16x16xf32, #tpu.memory_space<vmem>>, %arg2: memref<32x32xf32, #tpu.memory_space<vmem>>, %arg3: memref<32x32xf32, #tpu.memory_space<vmem>>, %arg4: memref<1x64x16xf32, #tpu.memory_space<vmem>>, %arg5: memref<1x64x16xf32, #tpu.memory_space<vmem>>) attributes {dimension_semantics = [#tpu.dimension_semantics<parallel>], iteration_bounds = array<i64: 1>, scalar_prefetch = 0 : i64, scratch_operands = 0 : i64, tpu.core_type = #tpu.core_type<tc>, window_params = [{pipeline_mode = #tpu.pipeline_mode<synchronous>, transform_indices = @transform_0, window_bounds = array<i64: 16, 16>}, {pipeline_mode = #tpu.pipeline_mode<synchronous>, transform_indices = @transform_1, window_bounds = array<i64: 32, 32>}, {pipeline_mode = #tpu.pipeline_mode<synchronous>, transform_indices = @transform_2, window_bounds = array<i64: 32, 32>}, {transform_indices = @transform_3, window_bounds = array<i64: 1, 64, 16>}, {transform_indices = @transform_4, window_bounds = array<i64: 1, 64, 16>}]} {
    %c0 = arith.constant 0 : index
    %c0_0 = arith.constant 0 : index
    %0 = vector.load %arg1[%c0, %c0_0] : memref<16x16xf32, #tpu.memory_space<vmem>>, vector<16x16xf32>
    %c0_1 = arith.constant 0 : index
    %c0_2 = arith.constant 0 : index
    %1 = vector.load %arg2[%c0_1, %c0_2] : memref<32x32xf32, #tpu.memory_space<vmem>>, vector<32x32xf32>
    %c0_3 = arith.constant 0 : index
    %c0_4 = arith.constant 0 : index
    %2 = vector.load %arg3[%c0_3, %c0_4] : memref<32x32xf32, #tpu.memory_space<vmem>>, vector<32x32xf32>
    %c0_5 = arith.constant 0 : index
    %c0_6 = arith.constant 0 : index
    %c0_7 = arith.constant 0 : index
    %3 = vector.load %arg4[%c0_5, %c0_6, %c0_7] : memref<1x64x16xf32, #tpu.memory_space<vmem>>, vector<1x32x16xf32>
    %4 = vector.shape_cast %3 : vector<1x32x16xf32> to vector<32x16xf32>
    %cst = arith.constant dense<0.000000e+00> : vector<32x16xf32>
    %5 = tpu.matmul %4, %0, %cst {dimension_numbers = #tpu.dot_dimension_numbers<[1], [0], [0], [1], [0, 0, 1, 1], [], []>} : vector<32x16xf32>, vector<16x16xf32>, vector<32x16xf32> -> vector<32x16xf32>
    %cst_8 = arith.constant dense<0.000000e+00> : vector<32x16xf32>
    %6 = tpu.matmul %1, %5, %cst_8 {dimension_numbers = #tpu.dot_dimension_numbers<[1], [0], [0], [1], [0, 0, 1, 1], [], []>} : vector<32x32xf32>, vector<32x16xf32>, vector<32x16xf32> -> vector<32x16xf32>
    %cst_9 = arith.constant 0.000000e+00 : f32
    %7 = vector.broadcast %cst_9 : f32 to vector<32x16xf32>
    %8 = arith.maximumf %6, %7 : vector<32x16xf32>
    %cst_10 = arith.constant dense<0.000000e+00> : vector<32x16xf32>
    %9 = tpu.matmul %2, %8, %cst_10 {dimension_numbers = #tpu.dot_dimension_numbers<[1], [0], [0], [1], [0, 0, 1, 1], [], []>} : vector<32x32xf32>, vector<32x16xf32>, vector<32x16xf32> -> vector<32x16xf32>
    %cst_11 = arith.constant 0.000000e+00 : f32
    %10 = vector.broadcast %cst_11 : f32 to vector<32x16xf32>
    %11 = arith.maximumf %9, %10 : vector<32x16xf32>
    %c0_12 = arith.constant 0 : index
    %c0_13 = arith.constant 0 : index
    %c0_14 = arith.constant 0 : index
    %12 = vector.load %arg5[%c0_12, %c0_13, %c0_14] : memref<1x64x16xf32, #tpu.memory_space<vmem>>, vector<1x32x16xf32>
    %13 = vector.shape_cast %12 : vector<1x32x16xf32> to vector<32x16xf32>
    %14 = vector.shape_cast %11 : vector<32x16xf32> to vector<1x32x16xf32>
    tpu.vector_store %arg5[%c0_12, %c0_13, %c0_14], %14 {strides = array<i32>} : memref<1x64x16xf32, #tpu.memory_space<vmem>>, vector<1x32x16xf32>,
    %c0_15 = arith.constant 0 : index
    %c32 = arith.constant 32 : index
    %c0_16 = arith.constant 0 : index
    %15 = vector.load %arg4[%c0_15, %c32, %c0_16] : memref<1x64x16xf32, #tpu.memory_space<vmem>>, vector<1x32x16xf32>
    %16 = vector.shape_cast %15 : vector<1x32x16xf32> to vector<32x16xf32>
    %cst_17 = arith.constant dense<0.000000e+00> : vector<32x16xf32>
    %17 = tpu.matmul %16, %0, %cst_17 {dimension_numbers = #tpu.dot_dimension_numbers<[1], [0], [0], [1], [0, 0, 1, 1], [], []>} : vector<32x16xf32>, vector<16x16xf32>, vector<32x16xf32> -> vector<32x16xf32>
    %cst_18 = arith.constant dense<0.000000e+00> : vector<32x16xf32>
    %18 = tpu.matmul %1, %17, %cst_18 {dimension_numbers = #tpu.dot_dimension_numbers<[1], [0], [0], [1], [0, 0, 1, 1], [], []>} : vector<32x32xf32>, vector<32x16xf32>, vector<32x16xf32> -> vector<32x16xf32>
    %cst_19 = arith.constant 0.000000e+00 : f32
    %19 = vector.broadcast %cst_19 : f32 to vector<32x16xf32>
    %20 = arith.maximumf %18, %19 : vector<32x16xf32>
    %cst_20 = arith.constant dense<0.000000e+00> : vector<32x16xf32>
    %21 = tpu.matmul %2, %20, %cst_20 {dimension_numbers = #tpu.dot_dimension_numbers<[1], [0], [0], [1], [0, 0, 1, 1], [], []>} : vector<32x32xf32>, vector<32x16xf32>, vector<32x16xf32> -> vector<32x16xf32>
    %cst_21 = arith.constant 0.000000e+00 : f32
    %22 = vector.broadcast %cst_21 : f32 to vector<32x16xf32>
    %23 = arith.maximumf %21, %22 : vector<32x16xf32>
    %c0_22 = arith.constant 0 : index
    %c32_23 = arith.constant 32 : index
    %c0_24 = arith.constant 0 : index
    %24 = vector.load %arg5[%c0_22, %c32_23, %c0_24] : memref<1x64x16xf32, #tpu.memory_space<vmem>>, vector<1x32x16xf32>
    %25 = vector.shape_cast %24 : vector<1x32x16xf32> to vector<32x16xf32>
    %26 = vector.shape_cast %23 : vector<32x16xf32> to vector<1x32x16xf32>
    tpu.vector_store %arg5[%c0_22, %c32_23, %c0_24], %26 {strides = array<i32>} : memref<1x64x16xf32, #tpu.memory_space<vmem>>, vector<1x32x16xf32>,
    return
  }
  func.func @transform_0(%arg0: i32) -> (i32, i32) {
    %c0_i32 = arith.constant 0 : i32
    %c0_i32_0 = arith.constant 0 : i32
    %c0_i32_1 = arith.constant 0 : i32
    return %c0_i32, %c0_i32_0 : i32, i32
  }
  func.func @transform_1(%arg0: i32) -> (i32, i32) {
    %c0_i32 = arith.constant 0 : i32
    %c0_i32_0 = arith.constant 0 : i32
    %c0_i32_1 = arith.constant 0 : i32
    return %c0_i32, %c0_i32_0 : i32, i32
  }
  func.func @transform_2(%arg0: i32) -> (i32, i32) {
    %c0_i32 = arith.constant 0 : i32
    %c0_i32_0 = arith.constant 0 : i32
    %c0_i32_1 = arith.constant 0 : i32
    return %c0_i32, %c0_i32_0 : i32, i32
  }
  func.func @transform_3(%arg0: i32) -> (i32, i32, i32) {
    %c0_i32 = arith.constant 0 : i32
    %c0_i32_0 = arith.constant 0 : i32
    %c0_i32_1 = arith.constant 0 : i32
    return %arg0, %c0_i32, %c0_i32_0 : i32, i32, i32
  }
  func.func @transform_4(%arg0: i32) -> (i32, i32, i32) {
    %c0_i32 = arith.constant 0 : i32
    %c0_i32_0 = arith.constant 0 : i32
    %c0_i32_1 = arith.constant 0 : i32
    return %arg0, %c0_i32, %c0_i32_0 : i32, i32, i32
  }
}

</mosaic_0001>

<bundles_post_ra>
// kernel: drgl_block_forward.1
= control target key start
LH: loop header
LB: loop body
LE: loop exit
PB: predicated region body
PF: predicated region fallthrough
CT: control target
= control target key end

     0   :  { %vm31_vm0 = vcmask 130048   ;;  %vm73_vm1 = vcmask 261120   ;;  %s450_s0 = inlined_call_operand.vmem [shape: f32[16,16], index: 0, kind: input, shape index: {}]   ;;  %s451_s3 = inlined_call_operand.vmem [shape: f32[1,64,16], index: 3, kind: input, shape index: {}]   ;;  %s452_s1 = inlined_call_operand.vmem [shape: f32[32,32], index: 1, kind: input, shape index: {}]   ;;  %s453_s2 = inlined_call_operand.vmem [shape: f32[32,32], index: 2, kind: input, shape index: {}]   ;;  %s454_s4 = inlined_call_operand.vmem [shape: f32[1,64,16], index: 4, kind: output, shape index: {}]  }
   0x1   :  { %v18_v0 = vld [vmem:[%s450_s0 + $0x8] sm:$0xff]  ;;  %v17_v1 = vld [vmem:[%s450_s0] sm:$0xff]  ;;  %v29_v4 = vld [vmem:[%s451_s3 + $0x10] sm:$0xff] }
   0x2   :  { %311 = vmatpush.msra.mxu1 %v18_v0  ;;  %v28_v2 = vld [vmem:[%s451_s3 + $0x8] sm:$0xff]  ;;  %58 = vmatpush.msra.mxu0 %v18_v0  ;;  %v27_v3 = vld [vmem:[%s451_s3] sm:$0xff]  ;;  %v30_v5 = vld [vmem:[%s451_s3 + $0x18] sm:$0xff] }
   0x3   :  { %313 = vmatpush.msra.mxu3 %v18_v0  ;;  %v19_v10 = vld [vmem:[%s452_s1] sm:$0xff]  ;;  %v20_v11 = vld [vmem:[%s452_s1 + $0x8] sm:$0xff]  ;;  %v21_v12 = vld [vmem:[%s452_s1 + $0x10] sm:$0xff] }
   0x4   :  { %312 = vmatpush.msra.mxu1 %v17_v1  ;;  %59 = vmatpush.msra.mxu0 %v17_v1  ;;  %v22_v13 = vld [vmem:[%s452_s1 + $0x18] sm:$0xff]  ;;  %v169_v14 = vld [vmem:[%s451_s3 + $0x28] sm:$0xff]  ;;  %v170_v15 = vld [vmem:[%s451_s3 + $0x30] sm:$0xff] }
   0x5   :  { %288 = vmatmul.msk.f32.vlgmr.msra.gmra.mxu1 %vm31_vm0, %v28_v2  ;;  %287 = vmatmul.msk.f32.vlgmr.msra.gmra.mxu0 %vm31_vm0, %v27_v3  ;;  %v171_v17 = vld [vmem:[%s451_s3 + $0x38] sm:$0xff]  ;;  %v23_v25 = vld [vmem:[%s453_s2] sm:$0xff]  ;;  %v24_v26 = vld [vmem:[%s453_s2 + $0x8] sm:$0xff] }
   0x6   :  { %314 = vmatpush.msra.mxu3 %v17_v1  ;;  %v25_v27 = vld [vmem:[%s453_s2 + $0x10] sm:$0xff]  ;;  %v26_v28 = vld [vmem:[%s453_s2 + $0x18] sm:$0xff]  ;;  %v168_v29 = vld [vmem:[%s451_s3 + $0x20] sm:$0xff] }
   0x7   :  { %300 = vmatmul.msk.f32.vlgmr.msra.gmra.mxu3 %vm31_vm0, %v169_v14 }
   0xd   :  { %289 = vmatmul.msk.f32.gmra.mxu1 %vm31_vm0, %v29_v4 }
   0xf   :  { %301 = vmatmul.msk.f32.gmra.mxu3 %vm31_vm0, %v170_v15 }
  0x15   :  { %290 = vmatmul.msk.f32.gmra.mxu1 %vm31_vm0, %v30_v5 }
  0x17   :  { %302 = vmatmul.msk.f32.gmra.mxu3 %vm31_vm0, %v171_v17 }
  0x82   :  { %v64_v6 = vpop.f32.mrf.mxu1  ;;  %v61_v9 = vpop.f32.mrf.mxu0 }
  0x8a   :  { %v67_v7 = vpop.f32.mrf.mxu1  ;;  %v204_v30 = vpop.f32.mrf.mxu3 }
  0x92   :  { %v70_v8 = vpop.f32.mrf.mxu1  ;;  %v207_v31 = vpop.f32.mrf.mxu3 }
  0x93   :  { %98 = vmatpush.msrb.mxu1 %v70_v8 }
  0x95   :  { %99 = vmatpush.msrb.mxu1 %v67_v7 }
  0x97   :  { %100 = vmatpush.msrb.mxu1 %v64_v6 }
  0x99   :  { %101 = vmatpush.msrb.mxu1 %v61_v9 }
  0x9a   :  { %291 = vmatmul.msk.f32.vlgmr.msrb.gmra.mxu1 %vm73_vm1, %v19_v10  ;;  %v210_v32 = vpop.f32.mrf.mxu3 }
  0x9b   :  { %225 = vmatpush.msrb.mxu0 %v210_v32 }
  0x9d   :  { %226 = vmatpush.msrb.mxu0 %v207_v31 }
  0x9f   :  { %227 = vmatpush.msrb.mxu0 %v204_v30 }
  0xa2   :  { %292 = vmatmul.msk.f32.gmra.mxu1 %vm73_vm1, %v20_v11 }
  0xaa   :  { %293 = vmatmul.msk.f32.gmra.mxu1 %vm73_vm1, %v21_v12 }
  0xb2   :  { %294 = vmatmul.msk.f32.gmra.mxu1 %vm73_vm1, %v22_v13 }
 0x117   :  { %v103_v16 = vpop.f32.mrf.mxu1 }
 0x118   :  { %v115_v24 = vmax.f32 %v103_v16, 0.0 }
 0x11f   :  { %v106_v18 = vpop.f32.mrf.mxu1 }
 0x120   :  { %v116_v23 = vmax.f32 %v106_v18, 0.0 }
 0x127   :  { %v109_v19 = vpop.f32.mrf.mxu1 }
 0x128   :  { %v117_v22 = vmax.f32 %v109_v19, 0.0 }
 0x12f   :  { %v112_v20 = vpop.f32.mrf.mxu1 }
 0x130   :  { %v118_v21 = vmax.f32 %v112_v20, 0.0 }
 0x132   :  { %143 = vmatpush.msra.mxu2 %v118_v21 }
 0x134   :  { %144 = vmatpush.msra.mxu2 %v117_v22 }
 0x136   :  { %145 = vmatpush.msra.mxu2 %v116_v23 }
 0x138   :  { %146 = vmatpush.msra.mxu2 %v115_v24 }
 0x139   :  { %295 = vmatmul.msk.f32.vlgmr.msra.gmra.mxu2 %vm73_vm1, %v23_v25 }
 0x13a   :  { %198 = vmatpush.msrb.mxu2 %v18_v0 }
 0x13c   :  { %199 = vmatpush.msrb.mxu2 %v17_v1 }
 0x141   :  { %296 = vmatmul.msk.f32.gmra.mxu2 %vm73_vm1, %v24_v26 }
 0x149   :  { %297 = vmatmul.msk.f32.gmra.mxu2 %vm73_vm1, %v25_v27 }
 0x151   :  { %298 = vmatmul.msk.f32.gmra.mxu2 %vm73_vm1, %v26_v28 }
 0x159   :  { %299 = vmatmul.msk.f32.vlgmr.msrb.gmra.mxu2 %vm31_vm0, %v168_v29 }
 0x1bc   :  { %v148_v33 = vpop.f32.mrf.mxu2 }
 0x1bd   :  { %v160_v34 = vmax.f32 %v148_v33, 0.0 }
 0x1bf   :  { %164 = vst.msk [vmem:[%s454_s4] sm:$0xff] %vm31_vm0, %v160_v34 }
 0x1c4   :  { %v151_v35 = vpop.f32.mrf.mxu2 }
 0x1c5   :  { %v161_v36 = vmax.f32 %v151_v35, 0.0 }
 0x1c7   :  { %165 = vst.msk [vmem:[%s454_s4 + $0x8] sm:$0xff] %vm31_vm0, %v161_v36 }
 0x1cc   :  { %v154_v37 = vpop.f32.mrf.mxu2 }
 0x1cd   :  { %v162_v38 = vmax.f32 %v154_v37, 0.0 }
 0x1cf   :  { %166 = vst.msk [vmem:[%s454_s4 + $0x10] sm:$0xff] %vm31_vm0, %v162_v38 }
 0x1d4   :  { %v157_v39 = vpop.f32.mrf.mxu2 }
 0x1d5   :  { %v163_v40 = vmax.f32 %v157_v39, 0.0 }
 0x1d7   :  { %167 = vst.msk [vmem:[%s454_s4 + $0x18] sm:$0xff] %vm31_vm0, %v163_v40 }
 0x1dc   :  { %v201_v41 = vpop.f32.mrf.mxu2 }
 0x1dd   :  { %228 = vmatpush.msrb.mxu0 %v201_v41 }
 0x1de   :  { %303 = vmatmul.msk.f32.vlgmr.msrb.gmra.mxu0 %vm73_vm1, %v19_v10 }
 0x1e6   :  { %304 = vmatmul.msk.f32.gmra.mxu0 %vm73_vm1, %v20_v11 }
 0x1ee   :  { %305 = vmatmul.msk.f32.gmra.mxu0 %vm73_vm1, %v21_v12 }
 0x1f6   :  { %306 = vmatmul.msk.f32.gmra.mxu0 %vm73_vm1, %v22_v13 }
 0x25b   :  { %v230_v42 = vpop.f32.mrf.mxu0 }
 0x25c   :  { %v242_v49 = vmax.f32 %v230_v42, 0.0 }
 0x263   :  { %v233_v43 = vpop.f32.mrf.mxu0 }
 0x264   :  { %v243_v48 = vmax.f32 %v233_v43, 0.0 }
 0x26b   :  { %v236_v44 = vpop.f32.mrf.mxu0 }
 0x26c   :  { %v244_v47 = vmax.f32 %v236_v44, 0.0 }
 0x273   :  { %v239_v45 = vpop.f32.mrf.mxu0 }
 0x274   :  { %v245_v46 = vmax.f32 %v239_v45, 0.0 }
 0x276   :  { %258 = vmatpush.msrb.mxu3 %v245_v46 }
 0x278   :  { %259 = vmatpush.msrb.mxu3 %v244_v47 }
 0x27a   :  { %260 = vmatpush.msrb.mxu3 %v243_v48 }
 0x27c   :  { %261 = vmatpush.msrb.mxu3 %v242_v49 }
 0x27d   :  { %307 = vmatmul.msk.f32.vlgmr.msrb.gmra.mxu3 %vm73_vm1, %v23_v25 }
 0x285   :  { %308 = vmatmul.msk.f32.gmra.mxu3 %vm73_vm1, %v24_v26 }
 0x28d   :  { %309 = vmatmul.msk.f32.gmra.mxu3 %vm73_vm1, %v25_v27 }
 0x295   :  { %310 = vmatmul.msk.f32.gmra.mxu3 %vm73_vm1, %v26_v28 }
 0x300   :  { %v263_v50 = vpop.f32.mrf.mxu3 }
 0x301   :  { %v275_v51 = vmax.f32 %v263_v50, 0.0 }
 0x303   :  { %279 = vst.msk [vmem:[%s454_s4 + $0x20] sm:$0xff] %vm31_vm0, %v275_v51 }
 0x308   :  { %v266_v52 = vpop.f32.mrf.mxu3 }
 0x309   :  { %v276_v53 = vmax.f32 %v266_v52, 0.0 }
 0x30b   :  { %280 = vst.msk [vmem:[%s454_s4 + $0x28] sm:$0xff] %vm31_vm0, %v276_v53 }
 0x310   :  { %v269_v54 = vpop.f32.mrf.mxu3 }
 0x311   :  { %v277_v55 = vmax.f32 %v269_v54, 0.0 }
 0x313   :  { %281 = vst.msk [vmem:[%s454_s4 + $0x30] sm:$0xff] %vm31_vm0, %v277_v55 }
 0x318   :  { %v272_v56 = vpop.f32.mrf.mxu3 }
 0x319   :  { %v278_v57 = vmax.f32 %v272_v56, 0.0 }
 0x31b   :  { %282 = vst.msk [vmem:[%s454_s4 + $0x38] sm:$0xff] %vm31_vm0, %v278_v57 }

</bundles_post_ra>
